<compile_context>
chip_gen: v6e
topology: v6e:2x2x1
jax: 0.10.0
libtpu: 0.0.40
codegen_flags: <defaults>
</compile_context>

<pallas_src>
import jax
import jax.numpy as jnp
from jax import lax
from jax.experimental import pallas as pl
from jax.experimental.pallas import tpu as pltpu

B = 2      # batch
T = 8      # time steps
H = 32     # hidden size
IN = 1     # input size
OUT = 1    # output size


def rnn_kernel(x_ref, h0_ref, params_ref, y_ref, hf_ref):
    """Elman RNN over T steps with the Linear head fused per step.

    Shapes (all f32, in VMEM):
      x_ref      (B, T)        batch-first scalar inputs
      h0_ref     (B, H)        initial hidden state
      params_ref (H+4, H)      packed slab:
                                 rows 0..H-1 : w_hh.T
                                 row  H      : w_ih row      (w_ih[:, 0])
                                 row  H+1    : b_ih + b_hh
                                 row  H+2    : w_out row     (w_out[0, :])
                                 row  H+3    : b_out at lane 0
      y_ref      (B, T)        per-step Linear outputs (batch-first, lane-dense)
      hf_ref     (B, H)        final hidden state (aliases h0's HBM buffer)
    """
    b, t_steps = x_ref.shape
    hdim = h0_ref.shape[1]

    # Static, zero-cost views into the packed parameter slab.
    w_hh_t = params_ref[0:hdim, :]                     # (H, H) = w_hh.T
    w_ih_row = params_ref[hdim:hdim + 1, :]            # (1, H)
    bias_row = params_ref[hdim + 1:hdim + 2, :]        # (1, H)  (= b_ih + b_hh)
    w_out_row = params_ref[hdim + 2:hdim + 3, :]       # (1, H)
    b_out_11 = params_ref[hdim + 3:hdim + 4, 0:1]      # (1, 1)

    x_bt = x_ref[...]                                  # (B, T)
    col_ids = lax.broadcasted_iota(jnp.int32, (b, t_steps), 1)

    h = h0_ref[...]                                    # (B, H), vreg-resident
    y_acc = jnp.zeros((b, t_steps), jnp.float32)

    # Fully unrolled static recurrence; everything not depending on h is off the
    # serial MXU + tanh critical path and gets overlapped by the scheduler.
    for t in range(t_steps):
        px_t = x_bt[:, t:t + 1] * w_ih_row + bias_row  # (B, H), x-only work
        h = jnp.tanh(px_t + jnp.dot(h, w_hh_t,
                                    preferred_element_type=jnp.float32))
        y_col = jnp.sum(h * w_out_row, axis=-1, keepdims=True)   # (B, 1) head
        y_acc = jnp.where(col_ids == t, y_col, y_acc)            # place column t

    hf_ref[...] = h                                    # final hidden state
    y_ref[...] = y_acc + b_out_11                      # (B, T), one dense store


@jax.jit
def rnn_forward(x, h_state, w_ih, b_ih, w_hh, b_hh, w_out, b_out):
    """PyTorch-convention wrapper.

    x:       (B, T, 1) f32
    h_state: (1, B, H) f32
    returns: outs (B, T, 1), h_state (1, B, H)
    """
    b, t, _ = x.shape
    hdim = w_hh.shape[0]

    x_bt = x[:, :, 0].astype(jnp.float32)              # (B, T), single tile
    h0 = h_state[0].astype(jnp.float32)                # (B, H)

    # Pack all small parameters into one slab -> one DMA.
    b_out_row = jnp.zeros((hdim,), jnp.float32).at[0].set(
        b_out[0].astype(jnp.float32))
    extra = jnp.stack([
        w_ih[:, 0].astype(jnp.float32),                # w_ih row
        (b_ih + b_hh).astype(jnp.float32),             # folded bias
        w_out[0, :].astype(jnp.float32),               # w_out row
        b_out_row,                                     # b_out at lane 0
    ], axis=0)                                         # (4, H)
    params = jnp.concatenate(
        [jnp.transpose(w_hh).astype(jnp.float32), extra], axis=0)  # (H+4, H)

    vmem = pl.BlockSpec(memory_space=pltpu.MemorySpace.VMEM)
    y_bt, hf = pl.pallas_call(
        rnn_kernel,
        out_shape=(jax.ShapeDtypeStruct((b, t), jnp.float32),
                   jax.ShapeDtypeStruct((b, hdim), jnp.float32)),
        in_specs=[vmem, vmem, vmem],
        out_specs=(vmem, vmem),
        input_output_aliases={1: 1},                   # h0 buffer -> hf buffer
    )(x_bt, h0, params)

    outs = y_bt[:, :, None]                            # (B, T, 1), already batch-first
    h_final = hf[None]                                 # (1, B, H)
    return outs, h_final


def rnn_reference(x, h_state, w_ih, b_ih, w_hh, b_hh, w_out, b_out):
    """Pure-JAX reference matching torch.nn.RNN + Linear semantics."""
    def step(h, x_t):                                  # h (B,H), x_t (B,1)
        h_new = jnp.tanh(x_t @ w_ih.T + b_ih + h @ w_hh.T + b_hh)
        y_t = h_new @ w_out.T + b_out                  # (B, 1)
        return h_new, y_t

    h0 = h_state[0]                                    # (B, H)
    x_tbf = jnp.transpose(x, (1, 0, 2))                # (T, B, 1)
    h_last, ys = lax.scan(step, h0, x_tbf)             # ys (T, B, 1)
    return jnp.transpose(ys, (1, 0, 2)), h_last[None]


if __name__ == "__main__":
    key = jax.random.PRNGKey(0)
    kx, kh, k1, k2, k3, k4, k5, k6 = jax.random.split(key, 8)

    # Deterministic parameter init (PyTorch-style U(-1/sqrt(H), 1/sqrt(H)) ranges).
    s = 1.0 / jnp.sqrt(jnp.float32(H))
    w_ih = jax.random.uniform(k1, (H, IN), jnp.float32, -s, s)     # weight_ih_l0
    b_ih = jax.random.uniform(k2, (H,), jnp.float32, -s, s)        # bias_ih_l0
    w_hh = jax.random.uniform(k3, (H, H), jnp.float32, -s, s)      # weight_hh_l0
    b_hh = jax.random.uniform(k4, (H,), jnp.float32, -s, s)        # bias_hh_l0
    w_out = jax.random.uniform(k5, (OUT, H), jnp.float32, -s, s)   # out.weight
    b_out = jax.random.uniform(k6, (OUT,), jnp.float32, -s, s)     # out.bias

    x = jax.random.normal(kx, (B, T, IN), jnp.float32)
    h_state = jax.random.normal(kh, (1, B, H), jnp.float32)

    outs, h_new = rnn_forward(x, h_state, w_ih, b_ih, w_hh, b_hh, w_out, b_out)
    jax.block_until_ready((outs, h_new))

    ref_outs, ref_h = rnn_reference(x, h_state, w_ih, b_ih, w_hh, b_hh, w_out, b_out)
    assert outs.shape == (B, T, OUT) and h_new.shape == (1, B, H)
    assert jnp.allclose(outs, ref_outs, atol=1e-4, rtol=1e-4)
    assert jnp.allclose(h_new, ref_h, atol=1e-4, rtol=1e-4)

    print("KERNEL_OK")
</pallas_src>

<mosaic_0001>
module attributes {stable_mosaic.version = 11 : i64} {
  func.func @rnn_kernel(%arg0: memref<2x8xf32, #tpu.memory_space<vmem>>, %arg1: memref<2x32xf32, #tpu.memory_space<vmem>>, %arg2: memref<36x32xf32, #tpu.memory_space<vmem>>, %arg3: memref<2x8xf32, #tpu.memory_space<vmem>>, %arg4: memref<2x32xf32, #tpu.memory_space<vmem>>) attributes {dimension_semantics = [], scalar_prefetch = 0 : i64, scratch_operands = 0 : i64, tpu.core_type = #tpu.core_type<tc>} {
    %c0 = arith.constant 0 : index
    %c0_0 = arith.constant 0 : index
    %0 = vector.load %arg2[%c0, %c0_0] : memref<36x32xf32, #tpu.memory_space<vmem>>, vector<32x32xf32>
    %c32 = arith.constant 32 : index
    %c0_1 = arith.constant 0 : index
    %1 = vector.load %arg2[%c32, %c0_1] : memref<36x32xf32, #tpu.memory_space<vmem>>, vector<1x32xf32>
    %c33 = arith.constant 33 : index
    %c0_2 = arith.constant 0 : index
    %2 = vector.load %arg2[%c33, %c0_2] : memref<36x32xf32, #tpu.memory_space<vmem>>, vector<1x32xf32>
    %c34 = arith.constant 34 : index
    %c0_3 = arith.constant 0 : index
    %3 = vector.load %arg2[%c34, %c0_3] : memref<36x32xf32, #tpu.memory_space<vmem>>, vector<1x32xf32>
    %c35 = arith.constant 35 : index
    %c0_4 = arith.constant 0 : index
    %4 = vector.load %arg2[%c35, %c0_4] : memref<36x32xf32, #tpu.memory_space<vmem>>, vector<1x1xf32>
    %c0_5 = arith.constant 0 : index
    %c0_6 = arith.constant 0 : index
    %5 = vector.load %arg0[%c0_5, %c0_6] : memref<2x8xf32, #tpu.memory_space<vmem>>, vector<2x8xf32>
    %6 = tpu.iota {dimensions = array<i32: 1>} : vector<2x8xi32>
    %c0_7 = arith.constant 0 : index
    %c0_8 = arith.constant 0 : index
    %7 = vector.load %arg1[%c0_7, %c0_8] : memref<2x32xf32, #tpu.memory_space<vmem>>, vector<2x32xf32>
    %cst = arith.constant 0.000000e+00 : f32
    %8 = vector.broadcast %cst : f32 to vector<2x8xf32>
    %9 = vector.extract_strided_slice %5 {offsets = [0, 0], sizes = [2, 1], strides = [1, 1]} : vector<2x8xf32> to vector<2x1xf32>
    %10 = vector.broadcast %9 : vector<2x1xf32> to vector<2x32xf32>
    %11 = vector.broadcast %1 : vector<1x32xf32> to vector<2x32xf32>
    %12 = arith.mulf %10, %11 : vector<2x32xf32>
    %13 = vector.broadcast %2 : vector<1x32xf32> to vector<2x32xf32>
    %14 = arith.addf %12, %13 : vector<2x32xf32>
    %cst_9 = arith.constant dense<0.000000e+00> : vector<2x32xf32>
    %15 = tpu.matmul %7, %0, %cst_9 {dimension_numbers = #tpu.dot_dimension_numbers<[1], [0], [0], [1], [0, 0, 1, 1], [], []>} : vector<2x32xf32>, vector<32x32xf32>, vector<2x32xf32> -> vector<2x32xf32>
    %16 = arith.addf %14, %15 : vector<2x32xf32>
    %17 = math.tanh %16 : vector<2x32xf32>
    %18 = vector.broadcast %3 : vector<1x32xf32> to vector<2x32xf32>
    %19 = arith.mulf %17, %18 : vector<2x32xf32>
    %cst_10 = arith.constant dense<0.000000e+00> : vector<2xf32>
    %20 = vector.multi_reduction <add>, %19, %cst_10 [1] : vector<2x32xf32> to vector<2xf32>
    %21 = vector.shape_cast %20 : vector<2xf32> to vector<2x1xf32>
    %c0_i32 = arith.constant 0 : i32
    %22 = vector.broadcast %c0_i32 : i32 to vector<2x8xi32>
    %23 = arith.cmpi eq, %6, %22 : vector<2x8xi32>
    %24 = vector.shape_cast %21 : vector<2x1xf32> to vector<2x1xf32>
    %25 = vector.broadcast %24 : vector<2x1xf32> to vector<2x8xf32>
    %26 = arith.select %23, %25, %8 : vector<2x8xi1>, vector<2x8xf32>
    %27 = vector.extract_strided_slice %5 {offsets = [0, 1], sizes = [2, 1], strides = [1, 1]} : vector<2x8xf32> to vector<2x1xf32>
    %28 = vector.broadcast %27 : vector<2x1xf32> to vector<2x32xf32>
    %29 = vector.broadcast %1 : vector<1x32xf32> to vector<2x32xf32>
    %30 = arith.mulf %28, %29 : vector<2x32xf32>
    %31 = vector.broadcast %2 : vector<1x32xf32> to vector<2x32xf32>
    %32 = arith.addf %30, %31 : vector<2x32xf32>
    %cst_11 = arith.constant dense<0.000000e+00> : vector<2x32xf32>
    %33 = tpu.matmul %17, %0, %cst_11 {dimension_numbers = #tpu.dot_dimension_numbers<[1], [0], [0], [1], [0, 0, 1, 1], [], []>} : vector<2x32xf32>, vector<32x32xf32>, vector<2x32xf32> -> vector<2x32xf32>
    %34 = arith.addf %32, %33 : vector<2x32xf32>
    %35 = math.tanh %34 : vector<2x32xf32>
    %36 = vector.broadcast %3 : vector<1x32xf32> to vector<2x32xf32>
    %37 = arith.mulf %35, %36 : vector<2x32xf32>
    %cst_12 = arith.constant dense<0.000000e+00> : vector<2xf32>
    %38 = vector.multi_reduction <add>, %37, %cst_12 [1] : vector<2x32xf32> to vector<2xf32>
    %39 = vector.shape_cast %38 : vector<2xf32> to vector<2x1xf32>
    %c1_i32 = arith.constant 1 : i32
    %40 = vector.broadcast %c1_i32 : i32 to vector<2x8xi32>
    %41 = arith.cmpi eq, %6, %40 : vector<2x8xi32>
    %42 = vector.shape_cast %39 : vector<2x1xf32> to vector<2x1xf32>
    %43 = vector.broadcast %42 : vector<2x1xf32> to vector<2x8xf32>
    %44 = arith.select %41, %43, %26 : vector<2x8xi1>, vector<2x8xf32>
    %45 = vector.extract_strided_slice %5 {offsets = [0, 2], sizes = [2, 1], strides = [1, 1]} : vector<2x8xf32> to vector<2x1xf32>
    %46 = vector.broadcast %45 : vector<2x1xf32> to vector<2x32xf32>
    %47 = vector.broadcast %1 : vector<1x32xf32> to vector<2x32xf32>
    %48 = arith.mulf %46, %47 : vector<2x32xf32>
    %49 = vector.broadcast %2 : vector<1x32xf32> to vector<2x32xf32>
    %50 = arith.addf %48, %49 : vector<2x32xf32>
    %cst_13 = arith.constant dense<0.000000e+00> : vector<2x32xf32>
    %51 = tpu.matmul %35, %0, %cst_13 {dimension_numbers = #tpu.dot_dimension_numbers<[1], [0], [0], [1], [0, 0, 1, 1], [], []>} : vector<2x32xf32>, vector<32x32xf32>, vector<2x32xf32> -> vector<2x32xf32>
    %52 = arith.addf %50, %51 : vector<2x32xf32>
    %53 = math.tanh %52 : vector<2x32xf32>
    %54 = vector.broadcast %3 : vector<1x32xf32> to vector<2x32xf32>
    %55 = arith.mulf %53, %54 : vector<2x32xf32>
    %cst_14 = arith.constant dense<0.000000e+00> : vector<2xf32>
    %56 = vector.multi_reduction <add>, %55, %cst_14 [1] : vector<2x32xf32> to vector<2xf32>
    %57 = vector.shape_cast %56 : vector<2xf32> to vector<2x1xf32>
    %c2_i32 = arith.constant 2 : i32
    %58 = vector.broadcast %c2_i32 : i32 to vector<2x8xi32>
    %59 = arith.cmpi eq, %6, %58 : vector<2x8xi32>
    %60 = vector.shape_cast %57 : vector<2x1xf32> to vector<2x1xf32>
    %61 = vector.broadcast %60 : vector<2x1xf32> to vector<2x8xf32>
    %62 = arith.select %59, %61, %44 : vector<2x8xi1>, vector<2x8xf32>
    %63 = vector.extract_strided_slice %5 {offsets = [0, 3], sizes = [2, 1], strides = [1, 1]} : vector<2x8xf32> to vector<2x1xf32>
    %64 = vector.broadcast %63 : vector<2x1xf32> to vector<2x32xf32>
    %65 = vector.broadcast %1 : vector<1x32xf32> to vector<2x32xf32>
    %66 = arith.mulf %64, %65 : vector<2x32xf32>
    %67 = vector.broadcast %2 : vector<1x32xf32> to vector<2x32xf32>
    %68 = arith.addf %66, %67 : vector<2x32xf32>
    %cst_15 = arith.constant dense<0.000000e+00> : vector<2x32xf32>
    %69 = tpu.matmul %53, %0, %cst_15 {dimension_numbers = #tpu.dot_dimension_numbers<[1], [0], [0], [1], [0, 0, 1, 1], [], []>} : vector<2x32xf32>, vector<32x32xf32>, vector<2x32xf32> -> vector<2x32xf32>
    %70 = arith.addf %68, %69 : vector<2x32xf32>
    %71 = math.tanh %70 : vector<2x32xf32>
    %72 = vector.broadcast %3 : vector<1x32xf32> to vector<2x32xf32>
    %73 = arith.mulf %71, %72 : vector<2x32xf32>
    %cst_16 = arith.constant dense<0.000000e+00> : vector<2xf32>
    %74 = vector.multi_reduction <add>, %73, %cst_16 [1] : vector<2x32xf32> to vector<2xf32>
    %75 = vector.shape_cast %74 : vector<2xf32> to vector<2x1xf32>
    %c3_i32 = arith.constant 3 : i32
    %76 = vector.broadcast %c3_i32 : i32 to vector<2x8xi32>
    %77 = arith.cmpi eq, %6, %76 : vector<2x8xi32>
    %78 = vector.shape_cast %75 : vector<2x1xf32> to vector<2x1xf32>
    %79 = vector.broadcast %78 : vector<2x1xf32> to vector<2x8xf32>
    %80 = arith.select %77, %79, %62 : vector<2x8xi1>, vector<2x8xf32>
    %81 = vector.extract_strided_slice %5 {offsets = [0, 4], sizes = [2, 1], strides = [1, 1]} : vector<2x8xf32> to vector<2x1xf32>
    %82 = vector.broadcast %81 : vector<2x1xf32> to vector<2x32xf32>
    %83 = vector.broadcast %1 : vector<1x32xf32> to vector<2x32xf32>
    %84 = arith.mulf %82, %83 : vector<2x32xf32>
    %85 = vector.broadcast %2 : vector<1x32xf32> to vector<2x32xf32>
    %86 = arith.addf %84, %85 : vector<2x32xf32>
    %cst_17 = arith.constant dense<0.000000e+00> : vector<2x32xf32>
    %87 = tpu.matmul %71, %0, %cst_17 {dimension_numbers = #tpu.dot_dimension_numbers<[1], [0], [0], [1], [0, 0, 1, 1], [], []>} : vector<2x32xf32>, vector<32x32xf32>, vector<2x32xf32> -> vector<2x32xf32>
    %88 = arith.addf %86, %87 : vector<2x32xf32>
    %89 = math.tanh %88 : vector<2x32xf32>
    %90 = vector.broadcast %3 : vector<1x32xf32> to vector<2x32xf32>
    %91 = arith.mulf %89, %90 : vector<2x32xf32>
    %cst_18 = arith.constant dense<0.000000e+00> : vector<2xf32>
    %92 = vector.multi_reduction <add>, %91, %cst_18 [1] : vector<2x32xf32> to vector<2xf32>
    %93 = vector.shape_cast %92 : vector<2xf32> to vector<2x1xf32>
    %c4_i32 = arith.constant 4 : i32
    %94 = vector.broadcast %c4_i32 : i32 to vector<2x8xi32>
    %95 = arith.cmpi eq, %6, %94 : vector<2x8xi32>
    %96 = vector.shape_cast %93 : vector<2x1xf32> to vector<2x1xf32>
    %97 = vector.broadcast %96 : vector<2x1xf32> to vector<2x8xf32>
    %98 = arith.select %95, %97, %80 : vector<2x8xi1>, vector<2x8xf32>
    %99 = vector.extract_strided_slice %5 {offsets = [0, 5], sizes = [2, 1], strides = [1, 1]} : vector<2x8xf32> to vector<2x1xf32>
    %100 = vector.broadcast %99 : vector<2x1xf32> to vector<2x32xf32>
    %101 = vector.broadcast %1 : vector<1x32xf32> to vector<2x32xf32>
    %102 = arith.mulf %100, %101 : vector<2x32xf32>
    %103 = vector.broadcast %2 : vector<1x32xf32> to vector<2x32xf32>
    %104 = arith.addf %102, %103 : vector<2x32xf32>
    %cst_19 = arith.constant dense<0.000000e+00> : vector<2x32xf32>
    %105 = tpu.matmul %89, %0, %cst_19 {dimension_numbers = #tpu.dot_dimension_numbers<[1], [0], [0], [1], [0, 0, 1, 1], [], []>} : vector<2x32xf32>, vector<32x32xf32>, vector<2x32xf32> -> vector<2x32xf32>
    %106 = arith.addf %104, %105 : vector<2x32xf32>
    %107 = math.tanh %106 : vector<2x32xf32>
    %108 = vector.broadcast %3 : vector<1x32xf32> to vector<2x32xf32>
    %109 = arith.mulf %107, %108 : vector<2x32xf32>
    %cst_20 = arith.constant dense<0.000000e+00> : vector<2xf32>
    %110 = vector.multi_reduction <add>, %109, %cst_20 [1] : vector<2x32xf32> to vector<2xf32>
    %111 = vector.shape_cast %110 : vector<2xf32> to vector<2x1xf32>
    %c5_i32 = arith.constant 5 : i32
    %112 = vector.broadcast %c5_i32 : i32 to vector<2x8xi32>
    %113 = arith.cmpi eq, %6, %112 : vector<2x8xi32>
    %114 = vector.shape_cast %111 : vector<2x1xf32> to vector<2x1xf32>
    %115 = vector.broadcast %114 : vector<2x1xf32> to vector<2x8xf32>
    %116 = arith.select %113, %115, %98 : vector<2x8xi1>, vector<2x8xf32>
    %117 = vector.extract_strided_slice %5 {offsets = [0, 6], sizes = [2, 1], strides = [1, 1]} : vector<2x8xf32> to vector<2x1xf32>
    %118 = vector.broadcast %117 : vector<2x1xf32> to vector<2x32xf32>
    %119 = vector.broadcast %1 : vector<1x32xf32> to vector<2x32xf32>
    %120 = arith.mulf %118, %119 : vector<2x32xf32>
    %121 = vector.broadcast %2 : vector<1x32xf32> to vector<2x32xf32>
    %122 = arith.addf %120, %121 : vector<2x32xf32>
    %cst_21 = arith.constant dense<0.000000e+00> : vector<2x32xf32>
    %123 = tpu.matmul %107, %0, %cst_21 {dimension_numbers = #tpu.dot_dimension_numbers<[1], [0], [0], [1], [0, 0, 1, 1], [], []>} : vector<2x32xf32>, vector<32x32xf32>, vector<2x32xf32> -> vector<2x32xf32>
    %124 = arith.addf %122, %123 : vector<2x32xf32>
    %125 = math.tanh %124 : vector<2x32xf32>
    %126 = vector.broadcast %3 : vector<1x32xf32> to vector<2x32xf32>
    %127 = arith.mulf %125, %126 : vector<2x32xf32>
    %cst_22 = arith.constant dense<0.000000e+00> : vector<2xf32>
    %128 = vector.multi_reduction <add>, %127, %cst_22 [1] : vector<2x32xf32> to vector<2xf32>
    %129 = vector.shape_cast %128 : vector<2xf32> to vector<2x1xf32>
    %c6_i32 = arith.constant 6 : i32
    %130 = vector.broadcast %c6_i32 : i32 to vector<2x8xi32>
    %131 = arith.cmpi eq, %6, %130 : vector<2x8xi32>
    %132 = vector.shape_cast %129 : vector<2x1xf32> to vector<2x1xf32>
    %133 = vector.broadcast %132 : vector<2x1xf32> to vector<2x8xf32>
    %134 = arith.select %131, %133, %116 : vector<2x8xi1>, vector<2x8xf32>
    %135 = vector.extract_strided_slice %5 {offsets = [0, 7], sizes = [2, 1], strides = [1, 1]} : vector<2x8xf32> to vector<2x1xf32>
    %136 = vector.broadcast %135 : vector<2x1xf32> to vector<2x32xf32>
    %137 = vector.broadcast %1 : vector<1x32xf32> to vector<2x32xf32>
    %138 = arith.mulf %136, %137 : vector<2x32xf32>
    %139 = vector.broadcast %2 : vector<1x32xf32> to vector<2x32xf32>
    %140 = arith.addf %138, %139 : vector<2x32xf32>
    %cst_23 = arith.constant dense<0.000000e+00> : vector<2x32xf32>
    %141 = tpu.matmul %125, %0, %cst_23 {dimension_numbers = #tpu.dot_dimension_numbers<[1], [0], [0], [1], [0, 0, 1, 1], [], []>} : vector<2x32xf32>, vector<32x32xf32>, vector<2x32xf32> -> vector<2x32xf32>
    %142 = arith.addf %140, %141 : vector<2x32xf32>
    %143 = math.tanh %142 : vector<2x32xf32>
    %144 = vector.broadcast %3 : vector<1x32xf32> to vector<2x32xf32>
    %145 = arith.mulf %143, %144 : vector<2x32xf32>
    %cst_24 = arith.constant dense<0.000000e+00> : vector<2xf32>
    %146 = vector.multi_reduction <add>, %145, %cst_24 [1] : vector<2x32xf32> to vector<2xf32>
    %147 = vector.shape_cast %146 : vector<2xf32> to vector<2x1xf32>
    %c7_i32 = arith.constant 7 : i32
    %148 = vector.broadcast %c7_i32 : i32 to vector<2x8xi32>
    %149 = arith.cmpi eq, %6, %148 : vector<2x8xi32>
    %150 = vector.shape_cast %147 : vector<2x1xf32> to vector<2x1xf32>
    %151 = vector.broadcast %150 : vector<2x1xf32> to vector<2x8xf32>
    %152 = arith.select %149, %151, %134 : vector<2x8xi1>, vector<2x8xf32>
    %c0_25 = arith.constant 0 : index
    %c0_26 = arith.constant 0 : index
    %153 = vector.load %arg4[%c0_25, %c0_26] : memref<2x32xf32, #tpu.memory_space<vmem>>, vector<2x32xf32>
    tpu.vector_store %arg4[%c0_25, %c0_26], %143 {strides = array<i32>} : memref<2x32xf32, #tpu.memory_space<vmem>>, vector<2x32xf32>,
    %154 = vector.broadcast %4 : vector<1x1xf32> to vector<2x8xf32>
    %155 = arith.addf %152, %154 : vector<2x8xf32>
    %c0_27 = arith.constant 0 : index
    %c0_28 = arith.constant 0 : index
    %156 = vector.load %arg3[%c0_27, %c0_28] : memref<2x8xf32, #tpu.memory_space<vmem>>, vector<2x8xf32>
    tpu.vector_store %arg3[%c0_27, %c0_28], %155 {strides = array<i32>} : memref<2x8xf32, #tpu.memory_space<vmem>>, vector<2x8xf32>,
    return
  }
}

</mosaic_0001>

<bundles_post_ra>
// kernel: rnn_forward.1
= control target key start
LH: loop header
LB: loop body
LE: loop exit
PB: predicated region body
PF: predicated region fallthrough
CT: control target
= control target key end

     0   :  { %v965_v1 = vmov 0.0   ;;  %vm966_vm0 = vmmov 0   ;;  %v967_v4 = vmov 0   ;;  %s1182_s0 = inlined_call_operand.vmem [shape: f32[2,8], index: 0, kind: input, shape index: {}]   ;;  %s1183_s1 = inlined_call_operand.vmem [shape: f32[2,32], index: 1, kind: input, shape index: {}, may-alias: {1,4}]   ;;  %s1184_s2 = inlined_call_operand.vmem [shape: f32[36,32], index: 2, kind: input, shape index: {}]   ;;  %s1185_s3 = inlined_call_operand.hbm [shape: f32[2,8], index: 3, kind: output, shape index: {0}]   ;;  %s1186_s4 = inlined_call_operand.vmem [shape: f32[2,32], index: 4, kind: output, shape index: {1}, may-alias: {1,4}]  }
   0x1   :  { %v1004_v0 = vld [vmem:[%s1184_s2 + $0x18] sm:$0xff]  ;;  %817 = vmatprep.subr.mxu0 %v965_v1  ;;  %v1010_v2 = vld [vmem:[%s1184_s2 + $0x10] sm:$0xff]  ;;  %825 = vmatprep.mubr.msk.f32.mxu0 %vm966_vm0, %v965_v1  ;;  %v1017_v3 = vld [vmem:[%s1182_s0] sm:$0x3] }
   0x2   :  { %818 = vmatpush3.msra.mxu0 %v1004_v0  ;;  %918 = vset.pattern.permute.xlu0 %v967_v4  ;;  %v1024_v5 = vld [vmem:[%s1184_s2 + $0x8] sm:$0xff] }
   0x3   :  { %819 = vmatprep.subr.mxu0 %v965_v1  ;;  %31 = vperm.xlu0 %918, %v1017_v3  }
   0x4   :  { %10 = vsyncpa [#allocation3], 0  ;;  %820 = vmatpush3.msra.mxu0 %v1010_v2  ;;  %v968_v6 = vmov 2   ;;  %v1032_v7 = vld [vmem:[%s1184_s2] sm:$0xff]  ;;  %vm44_vm1 = vcmask 261120   ;;  %828 = vmatprep.subr.mxu1 %v965_v1  ;;  %v969_v9 = vmov 3  }
   0x5   :  { %920 = vset.pattern.permute.xlu1 %v968_v6  ;;  %821 = vmatprep.subr.mxu0 %v965_v1  ;;  %v28_v8 = vld [vmem:[%s1183_s1] sm:$0x3]  ;;  %v970_v10 = vmov 4   ;;  %v971_v11 = vmov 6   ;;  %v972_v12 = vmov 1   ;;  %vm125_vm2 = vcmask 254976  }
   0x6   :  { %219 = vperm.xlu1 %920, %v1017_v3   ;;  %822 = vmatpush3.msra.mxu0 %v1024_v5  ;;  %v1071_v14 = vld [vmem:[%s1184_s2 + $0x20] ss:$0 sm:$0xff]  ;;  %v1077_v16 = vld [vmem:[%s1184_s2 + $0x21] ss:$0 sm:$0xff]  ;;  %v1083_v21 = vld [vmem:[%s1184_s2 + $0x22] ss:$0 sm:$0xff] }
   0x7   :  { %823 = vmatprep.subr.mxu0 %v965_v1  ;;  %829 = vmatpush3.msra.mxu1 %v1004_v0  ;;  %v973_v25 = vmov 5   ;;  %vm746_vm11 = vcmask 58368  }
   0x8   :  { %824 = vmatpush3.msra.mxu0 %v1032_v7  ;;  %830 = vmatprep.subr.mxu1 %v965_v1 }
   0x9   :  { %826 = vmatmul.mubr.msk.f32.vlgmr.msra.gmra.mxu0 %vm44_vm1, %v28_v8  ;;  %831 = vmatpush3.msra.mxu1 %v1010_v2 }
   0xa   :  { %921 = vset.pattern.permute.xlu1 %v969_v9  ;;  %832 = vmatprep.subr.mxu1 %v965_v1 }
   0xb   :  { %306 = vperm.xlu1 %921, %v1017_v3   ;;  %836 = vmatprep.mubr.msk.f32.mxu1 %vm966_vm0, %v965_v1 }
   0xc   :  { %833 = vmatpush3.msra.mxu1 %v1024_v5  ;;  %839 = vmatprep.subr.mxu0 %v965_v1 }
   0xd   :  { %834 = vmatprep.subr.mxu1 %v965_v1  ;;  %840 = vmatpush3.msra.mxu0 %v1004_v0 }
   0xe   :  { %835 = vmatpush3.msra.mxu1 %v1032_v7  ;;  %841 = vmatprep.subr.mxu0 %v965_v1 }
   0xf   :  { %922 = vset.pattern.permute.xlu1 %v970_v10  ;;  %842 = vmatpush3.msra.mxu0 %v1010_v2 }
  0x10   :  { %393 = vperm.xlu1 %922, %v1017_v3   ;;  %847 = vmatprep.mubr.msk.f32.mxu0 %vm966_vm0, %v965_v1 }
  0x11   :  { %843 = vmatprep.subr.mxu0 %v965_v1  ;;  %850 = vmatprep.subr.mxu1 %v965_v1 }
  0x12   :  { %844 = vmatpush3.msra.mxu0 %v1024_v5  ;;  %919 = vset.pattern.permute.xlu0 %v972_v12 }
  0x13   :  { %845 = vmatprep.subr.mxu0 %v965_v1  ;;  %132 = vperm.xlu0 %919, %v1017_v3  }
  0x14   :  { %924 = vset.pattern.permute.xlu1 %v971_v11  ;;  %846 = vmatpush3.msra.mxu0 %v1032_v7 }
  0x15   :  { %567 = vperm.xlu1 %924, %v1017_v3   ;;  %861 = vmatprep.subr.mxu0 %v965_v1 }
  0x17   :  { %923 = vset.pattern.permute.xlu0 %v973_v25 }
  0x18   :  { %480 = vperm.xlu0 %923, %v1017_v3  }
  0x7e   :  { %v32_v13 = vpop.permute.xlu0 %31 }
  0x7f   :  { %v38_v15 = vmul.f32 %v1071_v14, %v32_v13 }
  0x81   :  { %v43_v17 = vadd.f32 %v1077_v16, %v38_v15  ;;  %v220_v35 = vpop.permute.xlu1 %219 }
  0x82   :  { %v222_v36 = vmul.f32 %v1071_v14, %v220_v35 }
  0x84   :  { %v223_v37 = vadd.f32 %v1077_v16, %v222_v36 }
  0x86   :  { %v307_v44 = vpop.permute.xlu1 %306 }
  0x87   :  { %v309_v45 = vmul.f32 %v1071_v14, %v307_v44 }
  0x89   :  { %v310_v46 = vadd.f32 %v1077_v16, %v309_v45 }
  0x8b   :  { %v394_v53 = vpop.permute.xlu1 %393 }
  0x8c   :  { %v396_v54 = vmul.f32 %v1071_v14, %v394_v53 }
  0x8e   :  { %v133_v26 = vpop.permute.xlu0 %132  ;;  %v397_v55 = vadd.f32 %v1077_v16, %v396_v54 }
  0x8f   :  { %v135_v27 = vmul.f32 %v1071_v14, %v133_v26 }
  0x91   :  { %v136_v28 = vadd.f32 %v1077_v16, %v135_v27 }
  0x93   :  { %v481_v62 = vpop.permute.xlu0 %480 }
  0x94   :  { %v483_v63 = vmul.f32 %v1071_v14, %v481_v62 }
  0xc9   :  { %v114_v18 = vpop.f32.mrf.mxu0 }
  0xca   :  { %v118_v19 = vadd.f32 %v114_v18, %v43_v17 }
  0xcb   :  { %v827_v20 = vpop.f32.mrf.mxu0 }
  0xcc   :  { %927 = vtanh.f32 %v118_v19 }
  0xd9   :  { %v928_v22 = vpop.eup %927 }
  0xda   :  { %837 = vmatmul.mubr.msk.f32.vlgmr.msra.gmra.mxu1 %vm44_vm1, %v928_v22  ;;  %v124_v23 = vmul.f32 %v928_v22, %v1083_v21 }
  0xdb   :  { %851 = vmatpush3.msra.mxu1 %v1004_v0  ;;  %858 = vmatprep.mubr.msk.f32.mxu1 %vm966_vm0, %v965_v1 }
  0xdc   :  { %v126_v24 = vsel %vm125_vm2, %v124_v23, 0.0  ;;  %852 = vmatprep.subr.mxu1 %v965_v1 }
  0xdd   :  { %127 = vadd.xlane.f32.xlu1 %v126_v24  ;;  %853 = vmatpush3.msra.mxu1 %v1010_v2 }
  0xde   :  { %854 = vmatprep.subr.mxu1 %v965_v1 }
  0xdf   :  { %855 = vmatpush3.msra.mxu1 %v1024_v5 }
  0xe0   :  { %856 = vmatprep.subr.mxu1 %v965_v1 }
  0xe1   :  { %857 = vmatpush3.msra.mxu1 %v1032_v7 }
  0xe2   :  { %872 = vmatprep.subr.mxu1 %v965_v1 }
 0x19a   :  { %v206_v29 = vpop.f32.mrf.mxu1 }
 0x19b   :  { %v210_v30 = vadd.f32 %v206_v29, %v136_v28 }
 0x19c   :  { %v838_v31 = vpop.f32.mrf.mxu1 }
 0x19d   :  { %929 = vtanh.f32 %v210_v30 }
 0x1aa   :  { %v930_v32 = vpop.eup %929 }
 0x1ab   :  { %848 = vmatmul.mubr.msk.f32.vlgmr.msra.gmra.mxu0 %vm44_vm1, %v930_v32  ;;  %v212_v33 = vmul.f32 %v930_v32, %v1083_v21 }
 0x1ac   :  { %862 = vmatpush3.msra.mxu0 %v1004_v0  ;;  %869 = vmatprep.mubr.msk.f32.mxu0 %vm966_vm0, %v965_v1 }
 0x1ad   :  { %v213_v34 = vsel %vm125_vm2, %v212_v33, 0.0  ;;  %863 = vmatprep.subr.mxu0 %v965_v1  ;;  %v26_v33 = vlaneseq }
 0x1ae   :  { %214 = vadd.xlane.f32.xlu0 %v213_v34  ;;  %864 = vmatpush3.msra.mxu0 %v1010_v2 }
 0x1af   :  { %865 = vmatprep.subr.mxu0 %v965_v1 }
 0x1b0   :  { %866 = vmatpush3.msra.mxu0 %v1024_v5 }
 0x1b1   :  { %867 = vmatprep.subr.mxu0 %v965_v1 }
 0x1b2   :  { %868 = vmatpush3.msra.mxu0 %v1032_v7 }
 0x1b3   :  { %883 = vmatprep.subr.mxu0 %v965_v1 }
 0x237   :  { %v215_v34 = vpop.xlane.xlu0 %214 }
 0x26b   :  { %v293_v38 = vpop.f32.mrf.mxu0 }
 0x26c   :  { %v297_v39 = vadd.f32 %v293_v38, %v223_v37 }
 0x26d   :  { %v849_v40 = vpop.f32.mrf.mxu0 }
 0x26e   :  { %931 = vtanh.f32 %v297_v39 }
 0x27b   :  { %v932_v41 = vpop.eup %931 }
 0x27c   :  { %859 = vmatmul.mubr.msk.f32.vlgmr.msra.gmra.mxu1 %vm44_vm1, %v932_v41  ;;  %v299_v42 = vmul.f32 %v932_v41, %v1083_v21 }
 0x27d   :  { %873 = vmatpush3.msra.mxu1 %v1004_v0  ;;  %880 = vmatprep.mubr.msk.f32.mxu1 %vm966_vm0, %v965_v1 }
 0x27e   :  { %v300_v43 = vsel %vm125_vm2, %v299_v42, 0.0  ;;  %874 = vmatprep.subr.mxu1 %v965_v1 }
 0x27f   :  { %301 = vadd.xlane.f32.xlu0 %v300_v43  ;;  %875 = vmatpush3.msra.mxu1 %v1010_v2 }
 0x280   :  { %876 = vmatprep.subr.mxu1 %v965_v1 }
 0x281   :  { %877 = vmatpush3.msra.mxu1 %v1024_v5 }
 0x282   :  { %878 = vmatprep.subr.mxu1 %v965_v1 }
 0x283   :  { %879 = vmatpush3.msra.mxu1 %v1032_v7 }
 0x284   :  { %894 = vmatprep.subr.mxu1 %v965_v1 }
 0x308   :  { %v302_v35 = vpop.xlane.xlu0 %301 }
 0x33c   :  { %v380_v47 = vpop.f32.mrf.mxu1 }
 0x33d   :  { %v384_v48 = vadd.f32 %v380_v47, %v310_v46 }
 0x33e   :  { %v860_v49 = vpop.f32.mrf.mxu1 }
 0x33f   :  { %933 = vtanh.f32 %v384_v48 }
 0x34c   :  { %v934_v50 = vpop.eup %933 }
 0x34d   :  { %870 = vmatmul.mubr.msk.f32.vlgmr.msra.gmra.mxu0 %vm44_vm1, %v934_v50  ;;  %v386_v51 = vmul.f32 %v934_v50, %v1083_v21 }
 0x34e   :  { %884 = vmatpush3.msra.mxu0 %v1004_v0  ;;  %891 = vmatprep.mubr.msk.f32.mxu0 %vm966_vm0, %v965_v1 }
 0x34f   :  { %v387_v52 = vsel %vm125_vm2, %v386_v51, 0.0  ;;  %885 = vmatprep.subr.mxu0 %v965_v1 }
 0x350   :  { %388 = vadd.xlane.f32.xlu1 %v387_v52  ;;  %886 = vmatpush3.msra.mxu0 %v1010_v2 }
 0x351   :  { %887 = vmatprep.subr.mxu0 %v965_v1 }
 0x352   :  { %888 = vmatpush3.msra.mxu0 %v1024_v5 }
 0x353   :  { %889 = vmatprep.subr.mxu0 %v965_v1 }
 0x354   :  { %890 = vmatpush3.msra.mxu0 %v1032_v7 }
 0x40d   :  { %v467_v56 = vpop.f32.mrf.mxu0 }
 0x40e   :  { %v471_v57 = vadd.f32 %v467_v56, %v397_v55 }
 0x40f   :  { %v871_v58 = vpop.f32.mrf.mxu0 }
 0x410   :  { %935 = vtanh.f32 %v471_v57 }
 0x41d   :  { %v936_v59 = vpop.eup %935 }
 0x41e   :  { %881 = vmatmul.mubr.msk.f32.vlgmr.msra.gmra.mxu1 %vm44_vm1, %v936_v59  ;;  %v473_v60 = vmul.f32 %v936_v59, %v1083_v21 }
 0x41f   :  { %895 = vmatpush3.msra.mxu1 %v1004_v0  ;;  %902 = vmatprep.mubr.msk.f32.mxu1 %vm966_vm0, %v965_v1  ;;  %v484_v0 = vadd.f32 %v1077_v16, %v483_v63 }
 0x420   :  { %v474_v61 = vsel %vm125_vm2, %v473_v60, 0.0  ;;  %896 = vmatprep.subr.mxu1 %v965_v1 }
 0x421   :  { %475 = vadd.xlane.f32.xlu0 %v474_v61  ;;  %897 = vmatpush3.msra.mxu1 %v1010_v2 }
 0x422   :  { %898 = vmatprep.subr.mxu1 %v965_v1 }
 0x423   :  { %899 = vmatpush3.msra.mxu1 %v1024_v5 }
 0x424   :  { %900 = vmatprep.subr.mxu1 %v965_v1  ;;  %v974_v1 = vmov 7  }
 0x425   :  { %901 = vmatpush3.msra.mxu1 %v1032_v7  ;;  %925 = vset.pattern.permute.xlu1 %v974_v1  ;;  %v568_v7 = vpop.permute.xlu1 %567 }
 0x426   :  { %926 = vset.pattern.permute.xlu0 %v974_v1  ;;  %v570_v10 = vmul.f32 %v1071_v14, %v568_v7 }
 0x428   :  { %v571_v11 = vadd.f32 %v1077_v16, %v570_v10 }
 0x429   :  { %v128_v20 = vpop.xlane.xlu1 %127 }
 0x42d   :  { %v389_v22 = vpop.xlane.xlu1 %388 }
 0x4de   :  { %v554_v4 = vpop.f32.mrf.mxu1 }
 0x4df   :  { %v558_v6 = vadd.f32 %v554_v4, %v484_v0 }
 0x4e0   :  { %v882_v8 = vpop.f32.mrf.mxu1 }
 0x4e1   :  { %937 = vtanh.f32 %v558_v6 }
 0x4ee   :  { %v938_v9 = vpop.eup %937 }
 0x4ef   :  { %892 = vmatmul.mubr.msk.f32.vlgmr.msra.gmra.mxu0 %vm44_vm1, %v938_v9  ;;  %v560_v2 = vmul.f32 %v938_v9, %v1083_v21 }
 0x4f1   :  { %v561_v5 = vsel %vm125_vm2, %v560_v2, 0.0 }
 0x4f2   :  { %562 = vadd.xlane.f32.xlu1 %v561_v5 }
 0x503   :  { %654 = vperm.xlu1 %925, %v1017_v3   ;;  %v24_v3 = vld [vmem:[%s1184_s2 + $0x23] sm:$0x1] }
 0x504   :  { %905 = vpush %v24_v3 }
 0x535   :  { %s906_s2 = spop %905 }
 0x536   :  { %v743_v42 = vstv %s906_s2 }
 0x57b   :  { %v563_v23 = vpop.xlane.xlu1 %562 }
 0x57f   :  { %v655_v24 = vpop.permute.xlu1 %654 }
 0x580   :  { %v657_v25 = vmul.f32 %v1071_v14, %v655_v24  ;;  %v27_v14 = vand.u32 127, %v26_v33 }
 0x582   :  { %v658_v26 = vadd.f32 %v1077_v16, %v657_v25  ;;  %vm129_vm3 = vcmp.eq.s32.totalorder %v27_v14, 0  ;;  %vm216_vm4 = vcmp.eq.s32.totalorder %v27_v14, 1  ;;  %v476_v16 = vpop.xlane.xlu0 %475  ;;  %vm303_vm5 = vcmp.eq.s32.totalorder %v27_v14, 2 }
 0x583   :  { %v130_v36 = vsel %vm129_vm3, %v128_v20, 0.0  ;;  %vm390_vm6 = vcmp.eq.s32.totalorder %v27_v14, 3  ;;  %vm477_vm7 = vcmp.eq.s32.totalorder %v27_v14, 4  ;;  %vm564_vm8 = vcmp.eq.s32.totalorder %v27_v14, 5 }
 0x584   :  { %v217_v37 = vsel %vm216_vm4, %v215_v34, %v130_v36  ;;  %vm651_vm9 = vcmp.eq.s32.totalorder %v27_v14, 6  ;;  %vm738_vm10 = vcmp.eq.s32.totalorder %v27_v14, 7 }
 0x585   :  { %v304_v38 = vsel %vm303_vm5, %v302_v35, %v217_v37 }
 0x5af   :  { %v641_v12 = vpop.f32.mrf.mxu0 }
 0x5b0   :  { %v645_v13 = vadd.f32 %v641_v12, %v571_v11 }
 0x5b1   :  { %v893_v15 = vpop.f32.mrf.mxu0 }
 0x5b2   :  { %939 = vtanh.f32 %v645_v13 }
 0x5bf   :  { %v940_v17 = vpop.eup %939 }
 0x5c0   :  { %903 = vmatmul.mubr.msk.f32.vlgmr.msra.gmra.mxu1 %vm44_vm1, %v940_v17  ;;  %v647_v18 = vmul.f32 %v940_v17, %v1083_v21 }
 0x5c2   :  { %v648_v19 = vsel %vm125_vm2, %v647_v18, 0.0 }
 0x5c3   :  { %649 = vadd.xlane.f32.xlu0 %v648_v19 }
 0x64c   :  { %v650_v39 = vpop.xlane.xlu0 %649 }
 0x680   :  { %v728_v27 = vpop.f32.mrf.mxu1 }
 0x681   :  { %v732_v28 = vadd.f32 %v728_v27, %v658_v26 }
 0x682   :  { %v904_v29 = vpop.f32.mrf.mxu1 }
 0x683   :  { %941 = vtanh.f32 %v732_v28 }
 0x690   :  { %v942_v30 = vpop.eup %941 }
 0x691   :  { %740 = vst.msk [vmem:[%s1186_s4] sm:$0x3] %vm125_vm2, %v942_v30  ;;  %v734_v31 = vmul.f32 %v942_v30, %v1083_v21  ;;  %v391_v21 = vsel %vm390_vm6, %v389_v22, %v304_v38  ;;  %s975_s4 = smov [#allocation2]  }
 0x692   :  { %v478_v40 = vsel %vm477_vm7, %v476_v16, %v391_v21  ;;  %s754_s9 = sshll.u32 %s975_s4, 4  ;;  %s755_s9 = int_to_ptr.vmem [resolvable:$true] %s754_s9 }
 0x693   :  { %v735_v32 = vsel %vm125_vm2, %v734_v31, 0.0  ;;  %v565_v41 = vsel %vm564_vm8, %v563_v23, %v478_v40  ;;  %s943_s10 = scalar_lea.vmem %s755_s9, 32  ;;  %p948_p1 = scmp.lt.s32.totalorder %s755_s9, %s755_s9 }
 0x694   :  { %736 = vadd.xlane.f32.xlu0 %v735_v32  ;;  %v652_v43 = vsel %vm651_vm9, %v650_v39, %v565_v41  ;;  %p944_p0 = scmp.ne.s32.totalorder %s755_s9, %s943_s10  ;;  %p949_p2 = scmp.lt.s32.totalorder %s943_s10, %s943_s10 }
 0x696   :  { %p950_p3 = por %p949_p2, %p948_p1 }
 0x698   :  { %p951_p4 = pnand %p950_p3, %p944_p0 }
 0x71d   :  { %v737_v44 = vpop.xlane.xlu0 %736 }
 0x71e   :  { %v739_v45 = vsel %vm738_vm10, %v737_v44, %v652_v43 }
 0x71f   :  { %v745_v46 = vadd.f32 %v743_v42, %v739_v45 }
 0x721   :  { %747 = vst.msk [vmem:[#allocation2] sm:$0x3] %vm746_vm11, %v745_v46 }
 0x722   :  { %954 = shalt.err (!%p951_p4)
}
 0x723   :  { %757 = dma.vmem_to_hbm [thread:$0]  %s755_s9, 32, %s1185_s3, [#allocation3]  }
 0x724   :  { %963 = dma.done.wait [#allocation3], 32  }
 0x725   :  { %964 = vsyncadd [#allocation3], 4294967264 }
 0x726   :  { %765 = vsyncpa [#allocation3], 1 }

</bundles_post_ra>
